<compile_context>
chip_gen: v7x
topology: tpu7x:2x2x1
jax: 0.10.0
libtpu: 0.0.40
codegen_flags: <defaults>
</compile_context>

<pallas_src>
import jax
import jax.numpy as jnp
import numpy as np
from jax.experimental import pallas as pl
from jax.experimental.pallas import tpu as pltpu

HIDDEN_SIZE = 16
NUM_CLASSES = 6
C_PAD = 128  # lane-dense padded class dimension for the fused FC store


# ----------------------------- Pallas kernel ------------------------------- #

def fused_lstm_fc_kernel(x_ref, wih_ref, whh_ref, b_ref, wfc_ref, bfc_ref, o_ref):
    """Entire RNN_LSTM forward (LSTM + flatten + FC) in one kernel invocation.

    x_ref   : (T*B, I)     t-major flattened input (flatten done in wrapper)
    wih_ref : (I, 4H)      W_ih^T, PyTorch gate packing [i, f, g, o]
    whh_ref : (H, 4H)      W_hh^T
    b_ref   : (1, 4H)      b_ih + b_hh
    wfc_ref : (T*H, C_PAD) fc weight^T, zero-padded on the class dim
    bfc_ref : (1, C_PAD)   fc bias, zero-padded
    o_ref   : (B, C_PAD)   padded logits (lane-dense store)
    """
    B = o_ref.shape[0]
    T = x_ref.shape[0] // B
    H = whh_ref.shape[0]

    wih = wih_ref[...]
    whh = whh_ref[...]
    bias = b_ref[...]

    # Hoisted input projection for every timestep: one (T*B, I) @ (I, 4H) matmul.
    gx = jnp.dot(x_ref[...], wih, preferred_element_type=jnp.float32) + bias

    # Fused-activation constants (hoisted, computed once).
    # sigmoid(x) = 0.5 * tanh(0.5 * x) + 0.5, so a single tanh over the whole
    # (B, 4H) gate vector covers the i/f/o (sigmoid) lanes and the g (tanh)
    # lanes at once: pre-scale by 0.5 on sigmoid lanes, post scale+offset back.
    lane = jax.lax.broadcasted_iota(jnp.int32, (1, 4 * H), 1)
    is_g = (lane >= 2 * H) & (lane < 3 * H)
    scale = jnp.where(is_g, jnp.float32(1.0), jnp.float32(0.5))   # pre == post
    offset = jnp.where(is_g, jnp.float32(0.0), jnp.float32(0.5))

    h = jnp.zeros((B, H), jnp.float32)
    c = jnp.zeros((B, H), jnp.float32)
    logits = jnp.broadcast_to(bfc_ref[...], o_ref.shape)          # (B, C_PAD)

    # T is small and static -> full unroll; h/c/logits stay in registers.
    for t in range(T):
        gates = gx[t * B:(t + 1) * B, :] + jnp.dot(
            h, whh, preferred_element_type=jnp.float32)           # (B, 4H)
        act = jnp.tanh(gates * scale) * scale + offset            # one EUP push
        i_g = act[:, 0:H]
        f_g = act[:, H:2 * H]
        g_g = act[:, 2 * H:3 * H]
        o_g = act[:, 3 * H:4 * H]
        c = f_g * c + i_g * g_g
        h = o_g * jnp.tanh(c)
        # FC folded into the loop: row block t*H:(t+1)*H of fc^T corresponds to
        # torch's out.reshape(B, -1) flatten order (t outer, h inner).
        logits = logits + jnp.dot(h, wfc_ref[t * H:(t + 1) * H, :],
                                  preferred_element_type=jnp.float32)

    o_ref[...] = logits


# ------------------------------- wrappers ---------------------------------- #

def rnn_lstm_forward(x, params):
    """x: (B, T, I) float32, batch_first like PyTorch. Returns (B, num_classes)."""
    B, T, I = x.shape
    H = HIDDEN_SIZE
    C = params["b_fc"].shape[-1]

    # t-major flatten done outside the kernel so per-step gate slices inside
    # the kernel are static contiguous sublane windows.
    x_tmajor = jnp.transpose(x, (1, 0, 2)).reshape(T * B, I)

    cost = pl.CostEstimate(
        flops=2 * (T * B * I * 4 * H + T * B * H * 4 * H + T * B * H * C_PAD),
        transcendentals=T * B * 5 * H,
        bytes_accessed=4 * (T * B * I + I * 4 * H + H * 4 * H + 4 * H
                            + T * H * C_PAD + C_PAD + B * C_PAD),
    )

    logits_pad = pl.pallas_call(
        fused_lstm_fc_kernel,
        out_shape=jax.ShapeDtypeStruct((B, C_PAD), jnp.float32),
        in_specs=[pl.BlockSpec(memory_space=pltpu.MemorySpace.VMEM)] * 6,
        out_specs=pl.BlockSpec(memory_space=pltpu.MemorySpace.VMEM),
        cost_estimate=cost,
    )(x_tmajor, params["w_ih_t"], params["w_hh_t"], params["b_gates"],
      params["w_fc_t_pad"], params["b_fc_pad"])

    return logits_pad[:, :C]


def init_params(key, input_size, hidden_size, sequence_length, num_classes):
    """Deterministic init mirroring PyTorch's default uniform(-1/sqrt(fan), +)."""
    k1, k2, k3, k4, k5, k6 = jax.random.split(key, 6)
    k_lstm = 1.0 / np.sqrt(hidden_size)
    w_ih = jax.random.uniform(k1, (4 * hidden_size, input_size),
                              jnp.float32, -k_lstm, k_lstm)
    w_hh = jax.random.uniform(k2, (4 * hidden_size, hidden_size),
                              jnp.float32, -k_lstm, k_lstm)
    b_ih = jax.random.uniform(k3, (4 * hidden_size,), jnp.float32, -k_lstm, k_lstm)
    b_hh = jax.random.uniform(k4, (4 * hidden_size,), jnp.float32, -k_lstm, k_lstm)

    fc_in = hidden_size * sequence_length
    k_fc = 1.0 / np.sqrt(fc_in)
    w_fc = jax.random.uniform(k5, (num_classes, fc_in), jnp.float32, -k_fc, k_fc)
    b_fc = jax.random.uniform(k6, (num_classes,), jnp.float32, -k_fc, k_fc)

    w_fc_t = w_fc.T                                              # (T*H, C)
    w_fc_t_pad = jnp.zeros((fc_in, C_PAD), jnp.float32).at[:, :num_classes].set(w_fc_t)
    b_fc_pad = jnp.zeros((1, C_PAD), jnp.float32).at[0, :num_classes].set(b_fc)

    return dict(
        w_ih_t=w_ih.T,                                           # (I, 4H)
        w_hh_t=w_hh.T,                                           # (H, 4H)
        b_gates=(b_ih + b_hh).reshape(1, 4 * hidden_size),       # (1, 4H)
        w_fc_t=w_fc_t, b_fc=b_fc,                                # unpadded (for ref)
        w_fc_t_pad=w_fc_t_pad, b_fc_pad=b_fc_pad,                # lane-dense fc
    )


def reference_forward(x, params):
    """Pure-JAX reference (same math as PyTorch) for a correctness check."""
    B, T, _ = x.shape
    H = HIDDEN_SIZE
    b = params["b_gates"]

    def step(carry, x_t):
        h, c = carry
        gates = x_t @ params["w_ih_t"] + h @ params["w_hh_t"] + b
        i = jax.nn.sigmoid(gates[:, :H])
        f = jax.nn.sigmoid(gates[:, H:2 * H])
        g = jnp.tanh(gates[:, 2 * H:3 * H])
        o = jax.nn.sigmoid(gates[:, 3 * H:])
        c = f * c + i * g
        h = o * jnp.tanh(c)
        return (h, c), h

    init = (jnp.zeros((B, H), jnp.float32), jnp.zeros((B, H), jnp.float32))
    _, hs = jax.lax.scan(step, init, jnp.transpose(x, (1, 0, 2)))
    out = jnp.transpose(hs, (1, 0, 2)).reshape(B, -1)
    return out @ params["w_fc_t"] + params["b_fc"]


if __name__ == "__main__":
    # Shapes implied by the module: B=2 (debug n_samples), T=8 (sequence_length),
    # I=8 (one-hot input_size), H=16 (hidden_size), C=6 (num_classes).
    B, T, I = 2, 8, 8

    key = jax.random.PRNGKey(0)
    kx, kp = jax.random.split(key)
    x = jax.random.normal(kx, (B, T, I), dtype=jnp.float32)
    params = init_params(kp, I, HIDDEN_SIZE, T, NUM_CLASSES)

    forward = jax.jit(rnn_lstm_forward)
    logits = jax.block_until_ready(forward(x, params))

    ref = jax.block_until_ready(reference_forward(x, params))
    np.testing.assert_allclose(np.asarray(logits), np.asarray(ref),
                               rtol=1e-4, atol=1e-4)

    print("KERNEL_OK")
</pallas_src>

<mosaic_0001>
module attributes {stable_mosaic.version = 11 : i64} {
  func.func @fused_lstm_fc_kernel(%arg0: memref<16x8xf32, #tpu.memory_space<vmem>>, %arg1: memref<8x64xf32, #tpu.memory_space<vmem>>, %arg2: memref<16x64xf32, #tpu.memory_space<vmem>>, %arg3: memref<1x64xf32, #tpu.memory_space<vmem>>, %arg4: memref<128x128xf32, #tpu.memory_space<vmem>>, %arg5: memref<1x128xf32, #tpu.memory_space<vmem>>, %arg6: memref<2x128xf32, #tpu.memory_space<vmem>>) attributes {dimension_semantics = [], scalar_prefetch = 0 : i64, scratch_operands = 0 : i64, tpu.core_type = #tpu.core_type<tc>} {
    %c0 = arith.constant 0 : index
    %c0_0 = arith.constant 0 : index
    %0 = vector.load %arg1[%c0, %c0_0] : memref<8x64xf32, #tpu.memory_space<vmem>>, vector<8x64xf32>
    %c0_1 = arith.constant 0 : index
    %c0_2 = arith.constant 0 : index
    %1 = vector.load %arg2[%c0_1, %c0_2] : memref<16x64xf32, #tpu.memory_space<vmem>>, vector<16x64xf32>
    %c0_3 = arith.constant 0 : index
    %c0_4 = arith.constant 0 : index
    %2 = vector.load %arg3[%c0_3, %c0_4] : memref<1x64xf32, #tpu.memory_space<vmem>>, vector<1x64xf32>
    %c0_5 = arith.constant 0 : index
    %c0_6 = arith.constant 0 : index
    %3 = vector.load %arg0[%c0_5, %c0_6] : memref<16x8xf32, #tpu.memory_space<vmem>>, vector<16x8xf32>
    %cst = arith.constant dense<0.000000e+00> : vector<16x64xf32>
    %4 = tpu.matmul %3, %0, %cst {dimension_numbers = #tpu.dot_dimension_numbers<[1], [0], [0], [1], [0, 0, 1, 1], [], []>} : vector<16x8xf32>, vector<8x64xf32>, vector<16x64xf32> -> vector<16x64xf32>
    %5 = vector.broadcast %2 : vector<1x64xf32> to vector<16x64xf32>
    %6 = arith.addf %4, %5 : vector<16x64xf32>
    %7 = tpu.iota {dimensions = array<i32: 1>} : vector<1x64xi32>
    %c32_i32 = arith.constant 32 : i32
    %8 = vector.broadcast %c32_i32 : i32 to vector<1x64xi32>
    %9 = arith.cmpi sge, %7, %8 : vector<1x64xi32>
    %c48_i32 = arith.constant 48 : i32
    %10 = vector.broadcast %c48_i32 : i32 to vector<1x64xi32>
    %11 = arith.cmpi slt, %7, %10 : vector<1x64xi32>
    %12 = arith.andi %9, %11 : vector<1x64xi1>
    %cst_7 = arith.constant 1.000000e+00 : f32
    %cst_8 = arith.constant 5.000000e-01 : f32
    %13 = vector.broadcast %cst_7 : f32 to vector<1x64xf32>
    %14 = vector.broadcast %cst_8 : f32 to vector<1x64xf32>
    %15 = arith.select %12, %13, %14 : vector<1x64xi1>, vector<1x64xf32>
    %cst_9 = arith.constant 0.000000e+00 : f32
    %cst_10 = arith.constant 5.000000e-01 : f32
    %16 = vector.broadcast %cst_9 : f32 to vector<1x64xf32>
    %17 = vector.broadcast %cst_10 : f32 to vector<1x64xf32>
    %18 = arith.select %12, %16, %17 : vector<1x64xi1>, vector<1x64xf32>
    %cst_11 = arith.constant 0.000000e+00 : f32
    %19 = vector.broadcast %cst_11 : f32 to vector<2x16xf32>
    %cst_12 = arith.constant 0.000000e+00 : f32
    %20 = vector.broadcast %cst_12 : f32 to vector<2x16xf32>
    %c0_13 = arith.constant 0 : index
    %c0_14 = arith.constant 0 : index
    %21 = vector.load %arg5[%c0_13, %c0_14] : memref<1x128xf32, #tpu.memory_space<vmem>>, vector<1x128xf32>
    %22 = vector.shape_cast %21 : vector<1x128xf32> to vector<1x128xf32>
    %23 = vector.broadcast %22 : vector<1x128xf32> to vector<2x128xf32>
    %24 = vector.extract_strided_slice %6 {offsets = [0, 0], sizes = [2, 64], strides = [1, 1]} : vector<16x64xf32> to vector<2x64xf32>
    %cst_15 = arith.constant dense<0.000000e+00> : vector<2x64xf32>
    %25 = tpu.matmul %19, %1, %cst_15 {dimension_numbers = #tpu.dot_dimension_numbers<[1], [0], [0], [1], [0, 0, 1, 1], [], []>} : vector<2x16xf32>, vector<16x64xf32>, vector<2x64xf32> -> vector<2x64xf32>
    %26 = arith.addf %24, %25 : vector<2x64xf32>
    %27 = vector.broadcast %15 : vector<1x64xf32> to vector<2x64xf32>
    %28 = arith.mulf %26, %27 : vector<2x64xf32>
    %29 = math.tanh %28 : vector<2x64xf32>
    %30 = vector.broadcast %15 : vector<1x64xf32> to vector<2x64xf32>
    %31 = arith.mulf %29, %30 : vector<2x64xf32>
    %32 = vector.broadcast %18 : vector<1x64xf32> to vector<2x64xf32>
    %33 = arith.addf %31, %32 : vector<2x64xf32>
    %34 = vector.extract_strided_slice %33 {offsets = [0, 0], sizes = [2, 16], strides = [1, 1]} : vector<2x64xf32> to vector<2x16xf32>
    %35 = vector.extract_strided_slice %33 {offsets = [0, 16], sizes = [2, 16], strides = [1, 1]} : vector<2x64xf32> to vector<2x16xf32>
    %36 = vector.extract_strided_slice %33 {offsets = [0, 32], sizes = [2, 16], strides = [1, 1]} : vector<2x64xf32> to vector<2x16xf32>
    %37 = vector.extract_strided_slice %33 {offsets = [0, 48], sizes = [2, 16], strides = [1, 1]} : vector<2x64xf32> to vector<2x16xf32>
    %38 = arith.mulf %35, %20 : vector<2x16xf32>
    %39 = arith.mulf %34, %36 : vector<2x16xf32>
    %40 = arith.addf %38, %39 : vector<2x16xf32>
    %41 = math.tanh %40 : vector<2x16xf32>
    %42 = arith.mulf %37, %41 : vector<2x16xf32>
    %c0_16 = arith.constant 0 : index
    %c0_17 = arith.constant 0 : index
    %43 = vector.load %arg4[%c0_16, %c0_17] : memref<128x128xf32, #tpu.memory_space<vmem>>, vector<16x128xf32>
    %cst_18 = arith.constant dense<0.000000e+00> : vector<2x128xf32>
    %44 = tpu.matmul %42, %43, %cst_18 {dimension_numbers = #tpu.dot_dimension_numbers<[1], [0], [0], [1], [0, 0, 1, 1], [], []>} : vector<2x16xf32>, vector<16x128xf32>, vector<2x128xf32> -> vector<2x128xf32>
    %45 = arith.addf %23, %44 : vector<2x128xf32>
    %46 = vector.extract_strided_slice %6 {offsets = [2, 0], sizes = [2, 64], strides = [1, 1]} : vector<16x64xf32> to vector<2x64xf32>
    %cst_19 = arith.constant dense<0.000000e+00> : vector<2x64xf32>
    %47 = tpu.matmul %42, %1, %cst_19 {dimension_numbers = #tpu.dot_dimension_numbers<[1], [0], [0], [1], [0, 0, 1, 1], [], []>} : vector<2x16xf32>, vector<16x64xf32>, vector<2x64xf32> -> vector<2x64xf32>
    %48 = arith.addf %46, %47 : vector<2x64xf32>
    %49 = vector.broadcast %15 : vector<1x64xf32> to vector<2x64xf32>
    %50 = arith.mulf %48, %49 : vector<2x64xf32>
    %51 = math.tanh %50 : vector<2x64xf32>
    %52 = vector.broadcast %15 : vector<1x64xf32> to vector<2x64xf32>
    %53 = arith.mulf %51, %52 : vector<2x64xf32>
    %54 = vector.broadcast %18 : vector<1x64xf32> to vector<2x64xf32>
    %55 = arith.addf %53, %54 : vector<2x64xf32>
    %56 = vector.extract_strided_slice %55 {offsets = [0, 0], sizes = [2, 16], strides = [1, 1]} : vector<2x64xf32> to vector<2x16xf32>
    %57 = vector.extract_strided_slice %55 {offsets = [0, 16], sizes = [2, 16], strides = [1, 1]} : vector<2x64xf32> to vector<2x16xf32>
    %58 = vector.extract_strided_slice %55 {offsets = [0, 32], sizes = [2, 16], strides = [1, 1]} : vector<2x64xf32> to vector<2x16xf32>
    %59 = vector.extract_strided_slice %55 {offsets = [0, 48], sizes = [2, 16], strides = [1, 1]} : vector<2x64xf32> to vector<2x16xf32>
    %60 = arith.mulf %57, %40 : vector<2x16xf32>
    %61 = arith.mulf %56, %58 : vector<2x16xf32>
    %62 = arith.addf %60, %61 : vector<2x16xf32>
    %63 = math.tanh %62 : vector<2x16xf32>
    %64 = arith.mulf %59, %63 : vector<2x16xf32>
    %c16 = arith.constant 16 : index
    %c0_20 = arith.constant 0 : index
    %65 = vector.load %arg4[%c16, %c0_20] : memref<128x128xf32, #tpu.memory_space<vmem>>, vector<16x128xf32>
    %cst_21 = arith.constant dense<0.000000e+00> : vector<2x128xf32>
    %66 = tpu.matmul %64, %65, %cst_21 {dimension_numbers = #tpu.dot_dimension_numbers<[1], [0], [0], [1], [0, 0, 1, 1], [], []>} : vector<2x16xf32>, vector<16x128xf32>, vector<2x128xf32> -> vector<2x128xf32>
    %67 = arith.addf %45, %66 : vector<2x128xf32>
    %68 = vector.extract_strided_slice %6 {offsets = [4, 0], sizes = [2, 64], strides = [1, 1]} : vector<16x64xf32> to vector<2x64xf32>
    %cst_22 = arith.constant dense<0.000000e+00> : vector<2x64xf32>
    %69 = tpu.matmul %64, %1, %cst_22 {dimension_numbers = #tpu.dot_dimension_numbers<[1], [0], [0], [1], [0, 0, 1, 1], [], []>} : vector<2x16xf32>, vector<16x64xf32>, vector<2x64xf32> -> vector<2x64xf32>
    %70 = arith.addf %68, %69 : vector<2x64xf32>
    %71 = vector.broadcast %15 : vector<1x64xf32> to vector<2x64xf32>
    %72 = arith.mulf %70, %71 : vector<2x64xf32>
    %73 = math.tanh %72 : vector<2x64xf32>
    %74 = vector.broadcast %15 : vector<1x64xf32> to vector<2x64xf32>
    %75 = arith.mulf %73, %74 : vector<2x64xf32>
    %76 = vector.broadcast %18 : vector<1x64xf32> to vector<2x64xf32>
    %77 = arith.addf %75, %76 : vector<2x64xf32>
    %78 = vector.extract_strided_slice %77 {offsets = [0, 0], sizes = [2, 16], strides = [1, 1]} : vector<2x64xf32> to vector<2x16xf32>
    %79 = vector.extract_strided_slice %77 {offsets = [0, 16], sizes = [2, 16], strides = [1, 1]} : vector<2x64xf32> to vector<2x16xf32>
    %80 = vector.extract_strided_slice %77 {offsets = [0, 32], sizes = [2, 16], strides = [1, 1]} : vector<2x64xf32> to vector<2x16xf32>
    %81 = vector.extract_strided_slice %77 {offsets = [0, 48], sizes = [2, 16], strides = [1, 1]} : vector<2x64xf32> to vector<2x16xf32>
    %82 = arith.mulf %79, %62 : vector<2x16xf32>
    %83 = arith.mulf %78, %80 : vector<2x16xf32>
    %84 = arith.addf %82, %83 : vector<2x16xf32>
    %85 = math.tanh %84 : vector<2x16xf32>
    %86 = arith.mulf %81, %85 : vector<2x16xf32>
    %c32 = arith.constant 32 : index
    %c0_23 = arith.constant 0 : index
    %87 = vector.load %arg4[%c32, %c0_23] : memref<128x128xf32, #tpu.memory_space<vmem>>, vector<16x128xf32>
    %cst_24 = arith.constant dense<0.000000e+00> : vector<2x128xf32>
    %88 = tpu.matmul %86, %87, %cst_24 {dimension_numbers = #tpu.dot_dimension_numbers<[1], [0], [0], [1], [0, 0, 1, 1], [], []>} : vector<2x16xf32>, vector<16x128xf32>, vector<2x128xf32> -> vector<2x128xf32>
    %89 = arith.addf %67, %88 : vector<2x128xf32>
    %90 = vector.extract_strided_slice %6 {offsets = [6, 0], sizes = [2, 64], strides = [1, 1]} : vector<16x64xf32> to vector<2x64xf32>
    %cst_25 = arith.constant dense<0.000000e+00> : vector<2x64xf32>
    %91 = tpu.matmul %86, %1, %cst_25 {dimension_numbers = #tpu.dot_dimension_numbers<[1], [0], [0], [1], [0, 0, 1, 1], [], []>} : vector<2x16xf32>, vector<16x64xf32>, vector<2x64xf32> -> vector<2x64xf32>
    %92 = arith.addf %90, %91 : vector<2x64xf32>
    %93 = vector.broadcast %15 : vector<1x64xf32> to vector<2x64xf32>
    %94 = arith.mulf %92, %93 : vector<2x64xf32>
    %95 = math.tanh %94 : vector<2x64xf32>
    %96 = vector.broadcast %15 : vector<1x64xf32> to vector<2x64xf32>
    %97 = arith.mulf %95, %96 : vector<2x64xf32>
    %98 = vector.broadcast %18 : vector<1x64xf32> to vector<2x64xf32>
    %99 = arith.addf %97, %98 : vector<2x64xf32>
    %100 = vector.extract_strided_slice %99 {offsets = [0, 0], sizes = [2, 16], strides = [1, 1]} : vector<2x64xf32> to vector<2x16xf32>
    %101 = vector.extract_strided_slice %99 {offsets = [0, 16], sizes = [2, 16], strides = [1, 1]} : vector<2x64xf32> to vector<2x16xf32>
    %102 = vector.extract_strided_slice %99 {offsets = [0, 32], sizes = [2, 16], strides = [1, 1]} : vector<2x64xf32> to vector<2x16xf32>
    %103 = vector.extract_strided_slice %99 {offsets = [0, 48], sizes = [2, 16], strides = [1, 1]} : vector<2x64xf32> to vector<2x16xf32>
    %104 = arith.mulf %101, %84 : vector<2x16xf32>
    %105 = arith.mulf %100, %102 : vector<2x16xf32>
    %106 = arith.addf %104, %105 : vector<2x16xf32>
    %107 = math.tanh %106 : vector<2x16xf32>
    %108 = arith.mulf %103, %107 : vector<2x16xf32>
    %c48 = arith.constant 48 : index
    %c0_26 = arith.constant 0 : index
    %109 = vector.load %arg4[%c48, %c0_26] : memref<128x128xf32, #tpu.memory_space<vmem>>, vector<16x128xf32>
    %cst_27 = arith.constant dense<0.000000e+00> : vector<2x128xf32>
    %110 = tpu.matmul %108, %109, %cst_27 {dimension_numbers = #tpu.dot_dimension_numbers<[1], [0], [0], [1], [0, 0, 1, 1], [], []>} : vector<2x16xf32>, vector<16x128xf32>, vector<2x128xf32> -> vector<2x128xf32>
    %111 = arith.addf %89, %110 : vector<2x128xf32>
    %112 = vector.extract_strided_slice %6 {offsets = [8, 0], sizes = [2, 64], strides = [1, 1]} : vector<16x64xf32> to vector<2x64xf32>
    %cst_28 = arith.constant dense<0.000000e+00> : vector<2x64xf32>
    %113 = tpu.matmul %108, %1, %cst_28 {dimension_numbers = #tpu.dot_dimension_numbers<[1], [0], [0], [1], [0, 0, 1, 1], [], []>} : vector<2x16xf32>, vector<16x64xf32>, vector<2x64xf32> -> vector<2x64xf32>
    %114 = arith.addf %112, %113 : vector<2x64xf32>
    %115 = vector.broadcast %15 : vector<1x64xf32> to vector<2x64xf32>
    %116 = arith.mulf %114, %115 : vector<2x64xf32>
    %117 = math.tanh %116 : vector<2x64xf32>
    %118 = vector.broadcast %15 : vector<1x64xf32> to vector<2x64xf32>
    %119 = arith.mulf %117, %118 : vector<2x64xf32>
    %120 = vector.broadcast %18 : vector<1x64xf32> to vector<2x64xf32>
    %121 = arith.addf %119, %120 : vector<2x64xf32>
    %122 = vector.extract_strided_slice %121 {offsets = [0, 0], sizes = [2, 16], strides = [1, 1]} : vector<2x64xf32> to vector<2x16xf32>
    %123 = vector.extract_strided_slice %121 {offsets = [0, 16], sizes = [2, 16], strides = [1, 1]} : vector<2x64xf32> to vector<2x16xf32>
    %124 = vector.extract_strided_slice %121 {offsets = [0, 32], sizes = [2, 16], strides = [1, 1]} : vector<2x64xf32> to vector<2x16xf32>
    %125 = vector.extract_strided_slice %121 {offsets = [0, 48], sizes = [2, 16], strides = [1, 1]} : vector<2x64xf32> to vector<2x16xf32>
    %126 = arith.mulf %123, %106 : vector<2x16xf32>
    %127 = arith.mulf %122, %124 : vector<2x16xf32>
    %128 = arith.addf %126, %127 : vector<2x16xf32>
    %129 = math.tanh %128 : vector<2x16xf32>
    %130 = arith.mulf %125, %129 : vector<2x16xf32>
    %c64 = arith.constant 64 : index
    %c0_29 = arith.constant 0 : index
    %131 = vector.load %arg4[%c64, %c0_29] : memref<128x128xf32, #tpu.memory_space<vmem>>, vector<16x128xf32>
    %cst_30 = arith.constant dense<0.000000e+00> : vector<2x128xf32>
    %132 = tpu.matmul %130, %131, %cst_30 {dimension_numbers = #tpu.dot_dimension_numbers<[1], [0], [0], [1], [0, 0, 1, 1], [], []>} : vector<2x16xf32>, vector<16x128xf32>, vector<2x128xf32> -> vector<2x128xf32>
    %133 = arith.addf %111, %132 : vector<2x128xf32>
    %134 = vector.extract_strided_slice %6 {offsets = [10, 0], sizes = [2, 64], strides = [1, 1]} : vector<16x64xf32> to vector<2x64xf32>
    %cst_31 = arith.constant dense<0.000000e+00> : vector<2x64xf32>
    %135 = tpu.matmul %130, %1, %cst_31 {dimension_numbers = #tpu.dot_dimension_numbers<[1], [0], [0], [1], [0, 0, 1, 1], [], []>} : vector<2x16xf32>, vector<16x64xf32>, vector<2x64xf32> -> vector<2x64xf32>
    %136 = arith.addf %134, %135 : vector<2x64xf32>
    %137 = vector.broadcast %15 : vector<1x64xf32> to vector<2x64xf32>
    %138 = arith.mulf %136, %137 : vector<2x64xf32>
    %139 = math.tanh %138 : vector<2x64xf32>
    %140 = vector.broadcast %15 : vector<1x64xf32> to vector<2x64xf32>
    %141 = arith.mulf %139, %140 : vector<2x64xf32>
    %142 = vector.broadcast %18 : vector<1x64xf32> to vector<2x64xf32>
    %143 = arith.addf %141, %142 : vector<2x64xf32>
    %144 = vector.extract_strided_slice %143 {offsets = [0, 0], sizes = [2, 16], strides = [1, 1]} : vector<2x64xf32> to vector<2x16xf32>
    %145 = vector.extract_strided_slice %143 {offsets = [0, 16], sizes = [2, 16], strides = [1, 1]} : vector<2x64xf32> to vector<2x16xf32>
    %146 = vector.extract_strided_slice %143 {offsets = [0, 32], sizes = [2, 16], strides = [1, 1]} : vector<2x64xf32> to vector<2x16xf32>
    %147 = vector.extract_strided_slice %143 {offsets = [0, 48], sizes = [2, 16], strides = [1, 1]} : vector<2x64xf32> to vector<2x16xf32>
    %148 = arith.mulf %145, %128 : vector<2x16xf32>
    %149 = arith.mulf %144, %146 : vector<2x16xf32>
    %150 = arith.addf %148, %149 : vector<2x16xf32>
    %151 = math.tanh %150 : vector<2x16xf32>
    %152 = arith.mulf %147, %151 : vector<2x16xf32>
    %c80 = arith.constant 80 : index
    %c0_32 = arith.constant 0 : index
    %153 = vector.load %arg4[%c80, %c0_32] : memref<128x128xf32, #tpu.memory_space<vmem>>, vector<16x128xf32>
    %cst_33 = arith.constant dense<0.000000e+00> : vector<2x128xf32>
    %154 = tpu.matmul %152, %153, %cst_33 {dimension_numbers = #tpu.dot_dimension_numbers<[1], [0], [0], [1], [0, 0, 1, 1], [], []>} : vector<2x16xf32>, vector<16x128xf32>, vector<2x128xf32> -> vector<2x128xf32>
    %155 = arith.addf %133, %154 : vector<2x128xf32>
    %156 = vector.extract_strided_slice %6 {offsets = [12, 0], sizes = [2, 64], strides = [1, 1]} : vector<16x64xf32> to vector<2x64xf32>
    %cst_34 = arith.constant dense<0.000000e+00> : vector<2x64xf32>
    %157 = tpu.matmul %152, %1, %cst_34 {dimension_numbers = #tpu.dot_dimension_numbers<[1], [0], [0], [1], [0, 0, 1, 1], [], []>} : vector<2x16xf32>, vector<16x64xf32>, vector<2x64xf32> -> vector<2x64xf32>
    %158 = arith.addf %156, %157 : vector<2x64xf32>
    %159 = vector.broadcast %15 : vector<1x64xf32> to vector<2x64xf32>
    %160 = arith.mulf %158, %159 : vector<2x64xf32>
    %161 = math.tanh %160 : vector<2x64xf32>
    %162 = vector.broadcast %15 : vector<1x64xf32> to vector<2x64xf32>
    %163 = arith.mulf %161, %162 : vector<2x64xf32>
    %164 = vector.broadcast %18 : vector<1x64xf32> to vector<2x64xf32>
    %165 = arith.addf %163, %164 : vector<2x64xf32>
    %166 = vector.extract_strided_slice %165 {offsets = [0, 0], sizes = [2, 16], strides = [1, 1]} : vector<2x64xf32> to vector<2x16xf32>
    %167 = vector.extract_strided_slice %165 {offsets = [0, 16], sizes = [2, 16], strides = [1, 1]} : vector<2x64xf32> to vector<2x16xf32>
    %168 = vector.extract_strided_slice %165 {offsets = [0, 32], sizes = [2, 16], strides = [1, 1]} : vector<2x64xf32> to vector<2x16xf32>
    %169 = vector.extract_strided_slice %165 {offsets = [0, 48], sizes = [2, 16], strides = [1, 1]} : vector<2x64xf32> to vector<2x16xf32>
    %170 = arith.mulf %167, %150 : vector<2x16xf32>
    %171 = arith.mulf %166, %168 : vector<2x16xf32>
    %172 = arith.addf %170, %171 : vector<2x16xf32>
    %173 = math.tanh %172 : vector<2x16xf32>
    %174 = arith.mulf %169, %173 : vector<2x16xf32>
    %c96 = arith.constant 96 : index
    %c0_35 = arith.constant 0 : index
    %175 = vector.load %arg4[%c96, %c0_35] : memref<128x128xf32, #tpu.memory_space<vmem>>, vector<16x128xf32>
    %cst_36 = arith.constant dense<0.000000e+00> : vector<2x128xf32>
    %176 = tpu.matmul %174, %175, %cst_36 {dimension_numbers = #tpu.dot_dimension_numbers<[1], [0], [0], [1], [0, 0, 1, 1], [], []>} : vector<2x16xf32>, vector<16x128xf32>, vector<2x128xf32> -> vector<2x128xf32>
    %177 = arith.addf %155, %176 : vector<2x128xf32>
    %178 = vector.extract_strided_slice %6 {offsets = [14, 0], sizes = [2, 64], strides = [1, 1]} : vector<16x64xf32> to vector<2x64xf32>
    %cst_37 = arith.constant dense<0.000000e+00> : vector<2x64xf32>
    %179 = tpu.matmul %174, %1, %cst_37 {dimension_numbers = #tpu.dot_dimension_numbers<[1], [0], [0], [1], [0, 0, 1, 1], [], []>} : vector<2x16xf32>, vector<16x64xf32>, vector<2x64xf32> -> vector<2x64xf32>
    %180 = arith.addf %178, %179 : vector<2x64xf32>
    %181 = vector.broadcast %15 : vector<1x64xf32> to vector<2x64xf32>
    %182 = arith.mulf %180, %181 : vector<2x64xf32>
    %183 = math.tanh %182 : vector<2x64xf32>
    %184 = vector.broadcast %15 : vector<1x64xf32> to vector<2x64xf32>
    %185 = arith.mulf %183, %184 : vector<2x64xf32>
    %186 = vector.broadcast %18 : vector<1x64xf32> to vector<2x64xf32>
    %187 = arith.addf %185, %186 : vector<2x64xf32>
    %188 = vector.extract_strided_slice %187 {offsets = [0, 0], sizes = [2, 16], strides = [1, 1]} : vector<2x64xf32> to vector<2x16xf32>
    %189 = vector.extract_strided_slice %187 {offsets = [0, 16], sizes = [2, 16], strides = [1, 1]} : vector<2x64xf32> to vector<2x16xf32>
    %190 = vector.extract_strided_slice %187 {offsets = [0, 32], sizes = [2, 16], strides = [1, 1]} : vector<2x64xf32> to vector<2x16xf32>
    %191 = vector.extract_strided_slice %187 {offsets = [0, 48], sizes = [2, 16], strides = [1, 1]} : vector<2x64xf32> to vector<2x16xf32>
    %192 = arith.mulf %189, %172 : vector<2x16xf32>
    %193 = arith.mulf %188, %190 : vector<2x16xf32>
    %194 = arith.addf %192, %193 : vector<2x16xf32>
    %195 = math.tanh %194 : vector<2x16xf32>
    %196 = arith.mulf %191, %195 : vector<2x16xf32>
    %c112 = arith.constant 112 : index
    %c0_38 = arith.constant 0 : index
    %197 = vector.load %arg4[%c112, %c0_38] : memref<128x128xf32, #tpu.memory_space<vmem>>, vector<16x128xf32>
    %cst_39 = arith.constant dense<0.000000e+00> : vector<2x128xf32>
    %198 = tpu.matmul %196, %197, %cst_39 {dimension_numbers = #tpu.dot_dimension_numbers<[1], [0], [0], [1], [0, 0, 1, 1], [], []>} : vector<2x16xf32>, vector<16x128xf32>, vector<2x128xf32> -> vector<2x128xf32>
    %199 = arith.addf %177, %198 : vector<2x128xf32>
    %c0_40 = arith.constant 0 : index
    %c0_41 = arith.constant 0 : index
    %200 = vector.load %arg6[%c0_40, %c0_41] : memref<2x128xf32, #tpu.memory_space<vmem>>, vector<2x128xf32>
    tpu.vector_store %arg6[%c0_40, %c0_41], %199 {strides = array<i32>} : memref<2x128xf32, #tpu.memory_space<vmem>>, vector<2x128xf32>,
    return
  }
}

</mosaic_0001>

<bundles_post_ra>
// kernel: rnn_lstm_forward.1
= control target key start
LH: loop header
LB: loop body
LE: loop exit
PB: predicated region body
PF: predicated region fallthrough
CT: control target
= control target key end

     0   :  { %11 = vsyncpa [#allocation3], 0  ;;  %s2151_s0 = inlined_call_operand.vmem [shape: f32[16,8], index: 0, kind: input, shape index: {}]   ;;  %s2152_s1 = inlined_call_operand.vmem [shape: f32[8,64], index: 1, kind: input, shape index: {}]   ;;  %s2153_s2 = inlined_call_operand.vmem [shape: f32[16,64], index: 2, kind: input, shape index: {}]   ;;  %s2154_s3 = inlined_call_operand.vmem [shape: f32[1,64], index: 3, kind: input, shape index: {}]   ;;  %s2155_s4 = inlined_call_operand.hbm [shape: f32[128,128], index: 4, kind: input, shape index: {}]   ;;  %s2156_s5 = inlined_call_operand.vmem [shape: f32[1,128], index: 5, kind: input, shape index: {}]   ;;  %s2157_s6 = inlined_call_operand.hbm [shape: f32[2,128], index: 6, kind: output, shape index: {}]  }
   0x1   :  { %12 = vsyncpa [#allocation4], 0  ;;  %s1913_s21 = smov [#allocation2]   ;;  %s1865_s25 = scalar_lea.hbm %s2155_s4, 2048 }
   0x2   :  { %s26_s22 = sshll.u32 %s1913_s21, 4  ;;  %p1866_p0 = scmp.ne.s32.totalorder %s2155_s4, %s1865_s25  ;;  %s27_s22 = int_to_ptr.vmem [resolvable:$true] %s26_s22 }
   0x3   :  { %p1869_p1 = scmp.lt.u32.totalorder %s1865_s25, %s2155_s4 }
   0x5   :  { %p1871_p2 = pnand %p1869_p1, %p1866_p0 }
   0x7   :  { %1874 = shalt.err (!%p1871_p2)
}
   0x8   :  { %s1875_s30 = scalar_lea.vmem %s27_s22, 2048  ;;  %p1880_p4 = scmp.lt.s32.totalorder %s27_s22, %s27_s22 }
   0x9   :  { %p1876_p3 = scmp.ne.s32.totalorder %s27_s22, %s1875_s30  ;;  %p1881_p5 = scmp.lt.s32.totalorder %s1875_s30, %s1875_s30 }
   0xb   :  { %p1882_p6 = por %p1881_p5, %p1880_p4 }
   0xd   :  { %p1883_p7 = pnand %p1882_p6, %p1876_p3 }
   0xf   :  { %1886 = shalt.err (!%p1883_p7)
}
  0x10   :  { %s1914_s7 = smov 128   ;;  %s1915_s8 = smov 8  }
  0x11   :  { %32 = dma.hbm_to_vmem [thread:$0]  %s2155_s4, 2048, %s27_s22, [#allocation3], %s1914_s7, %s1914_s7, %s1915_s8  }
  0x12   :  { %1909 = dma.done.wait [#allocation3], 2048  }
  0x13   :  { %1910 = vsyncadd [#allocation3], 4294965248  ;;  %v1916_v0 = vmov 0.0|0.0   ;;  %vm1917_vm0 = vmmov 0   ;;  %v1918_v1 = vmov 0.0   ;;  %vm50_vm1 = vcmask 64512  }
  0x14   :  { %1758 = vmatprep.subr.bf16.mxu1 %v1916_v0  ;;  %1650 = vmatprep.mubr.msk.f32.mxu1 %vm1917_vm0, %v1918_v1  ;;  %v38_v2 = vld [vmem:[%s2152_s1] sm:$0xff]  ;;  %v43_v4 = vld [vmem:[%s2151_s0 + $0x8] sm:$0xff]  ;;  %v132_v8 = vlaneseq  ;;  %v1919_v15 = vmov 0.5   ;;  %s1922_s20 = smov 32   ;;  %s1923_s21 = smov 80   ;;  %vm146_vm5 = vcmask 130048  }
  0x15   :  { %v42_v3 = vld [vmem:[%s2151_s0] sm:$0xff]  ;;  %1641 = vmatprep.subr.mxu0 %v38_v2  ;;  %v40_v6 = vld [vmem:[%s2153_s2 + $0x8] sm:$0xff]  ;;  %v418_v51 = vld [vmem:[#allocation2 + $0x10] sm:$0xff]  ;;  %s1924_s24 = smov [#allocation5]  }
  0x16   :  { %1643 = vmatprep.mubr.msk.f32.mxu0 %vm50_vm1, %v42_v3  ;;  %v39_v5 = vld [vmem:[%s2153_s2] sm:$0xff]  ;;  %1642 = vmatpush3.msra.mxu0 %v38_v2  ;;  %v133_v9 = vand.u32 127, %v132_v8  ;;  %s1920_s2 = smov 96   ;;  %v243_v31 = vld [vmem:[#allocation2 + $0x8] sm:$0xff]  ;;  %v419_v52 = vld [vmem:[#allocation2 + $0x18] sm:$0xff]  ;;  %s1562_s25 = sshll.u32 %s1924_s24, 4  ;;  %s1563_s25 = int_to_ptr.vmem [resolvable:$true] %s1562_s25 }
  0x17   :  { %v1990_v7 = vpack.c.bf16 %v40_v6, %v39_v5  ;;  %1644 = vmatmul.mubr.msk.f32.vlgmr.msra.gmra.mrb[0].mxu0 %vm50_vm1, %v43_v4  ;;  %1761 = vmatprep.subr.bf16.mxu0 %v1916_v0  ;;  %v1571_v10 = vld [vmem:[%s2154_s3] ss:$0 sm:$0xff]  ;;  %s1921_s3 = smov 16   ;;  %v1768_v53 = vpack.c.bf16 %v419_v52, %v418_v51  ;;  %s1887_s26 = scalar_lea.vmem %s1563_s25, 32 }
  0x18   :  { %1657 = vmatprep.mubr.msk.f32.mxu0 %vm1917_vm0, %v1918_v1  ;;  %vm134_vm2 = vcmp.ge.s32.totalorder %v133_v9, 32  ;;  %vm135_vm3 = vcmp.lt.s32.totalorder %v133_v9, 48  ;;  %v242_v30 = vld [vmem:[#allocation2] sm:$0xff]  ;;  %p1888_p8 = scmp.ne.s32.totalorder %s1563_s25, %s1887_s26  ;;  %p1892_p9 = scmp.lt.s32.totalorder %s1563_s25, %s1563_s25 }
  0x19   :  { %1760 = vmatpush3.bf16.msra.mxu1 %v1990_v7  ;;  %vm136_vm4 = vmand %vm134_vm2, %vm135_vm3  ;;  %v1762_v32 = vpack.c.bf16 %v243_v31, %v242_v30  ;;  %p1893_p10 = scmp.lt.s32.totalorder %s1887_s26, %s1887_s26 }
  0x1a   :  { %1764 = vmatprep.subr.bf16.mxu1 %v1916_v0  ;;  %v2009_v16 = vsel %vm136_vm4, 1.0, %v1919_v15  ;;  %v2013_v22 = vsel %vm136_vm4, 0.0, %v1919_v15  ;;  %v596_v15 = vld [vmem:[#allocation2 + $0x28] sm:$0xff] }
  0x1b   :  { %1763 = vmatpush3.bf16.msra.mxu0 %v1762_v32  ;;  %p1894_p11 = por %p1893_p10, %p1892_p9 }
  0x1c   :  { %1651 = vmatmul.mubr.f32.vlgmr.msra.gmra.mrb[0].mxu1 %v1918_v1  ;;  %1767 = vmatprep.subr.bf16.mxu0 %v1916_v0 }
  0x1d   :  { %1766 = vmatpush3.bf16.msra.mxu1 %v1990_v7  ;;  %1664 = vmatprep.mubr.msk.f32.mxu1 %vm1917_vm0, %v1918_v1  ;;  %p1895_p12 = pnand %p1894_p11, %p1888_p8 }
  0x1e   :  { %1770 = vmatprep.subr.bf16.mxu1 %v1916_v0 }
  0xea   :  { %v1645_v11 = vpop.f32.mrb[0].mxu0 }
  0xeb   :  { %v2005_v12 = vadd.f32 %v1645_v11, %v1571_v10  ;;  %v123_v13 = vpop.f32.mrb[1].mxu0 }
  0xec   :  { %v2007_v14 = vadd.f32 %v1571_v10, %v123_v13  ;;  %v595_v13 = vld [vmem:[#allocation2 + $0x20] sm:$0xff] }
  0xef   :  { %v216_v17 = vpop.f32.mrb[0].mxu1 }
  0xf0   :  { %v220_v18 = vadd.f32 %v216_v17, %v2007_v14  ;;  %v1652_v19 = vpop.f32.mrb[1].mxu1  ;;  %v1774_v17 = vpack.c.bf16 %v596_v15, %v595_v13 }
  0xf2   :  { %v221_v20 = vmul.f32 %v220_v18, %v2009_v16 }
  0xf4   :  { %1833 = vtanh.f32 %v221_v20 }
  0xfe   :  { %v1834_v21 = vpop.eup %1833 }
  0xff   :  { %v223_v23 = vmul.f32 %v1834_v21, %v2009_v16 }
 0x101   :  { %v224_v24 = vadd.f32 %v223_v23, %v2013_v22 }
 0x103   :  { %227 = vrot.lane.b32.xlu0 %v224_v24, %s1920_s2  ;;  %v225_v27 = vmul.f32 0.0, %v224_v24 }
 0x175   :  { %v228_v25 = vpop.permute.xlu0 %227 }
 0x176   :  { %v230_v26 = vmul.f32 %v228_v25, %v224_v24 }
 0x178   :  { %232 = vrot.lane.b32.xlu0 %v230_v26, %s1921_s3 }
 0x1ea   :  { %v233_v28 = vpop.permute.xlu0 %232 }
 0x1eb   :  { %v235_v29 = vadd.f32 %v233_v28, %v225_v27 }
 0x1ed   :  { %1835 = vtanh.f32 %v235_v29  ;;  %v399_v47 = vrot.slane %v235_v29, 6 }
 0x1f7   :  { %v1836_v33 = vpop.eup %1835 }
 0x1f8   :  { %238 = vrot.lane.b32.xlu1 %v1836_v33, %s1922_s20 }
 0x26a   :  { %v239_v34 = vpop.permute.xlu1 %238 }
 0x26b   :  { %v241_v35 = vmul.f32 %v239_v34, %v224_v24 }
 0x26d   :  { %245 = vrot.lane.b32.xlu1 %v241_v35, %s1923_s21 }
 0x2df   :  { %v246_v36 = vpop.permute.xlu1 %245 }
 0x2e0   :  { %1658 = vmatmul.mubr.msk.f32.vlgmr.msra.gmra.mrb[2].mxu0 %vm146_vm5, %v246_v36  ;;  %1665 = vmatmul.mubr.msk.f32.vlgmr.msra.gmra.mrb[2].mxu1 %vm146_vm5, %v246_v36 }
 0x2e1   :  { %1772 = vmatpush3.bf16.msra.mxu1 %v1990_v7  ;;  %1678 = vmatprep.mubr.msk.f32.mxu1 %vm1917_vm0, %v1918_v1 }
 0x2e2   :  { %1671 = vmatprep.mubr.msk.f32.mxu0 %vm1917_vm0, %v1918_v1  ;;  %1776 = vmatprep.subr.bf16.mxu1 %v1916_v0 }
 0x2e3   :  { %1769 = vmatpush3.bf16.msra.mxu0 %v1768_v53 }
 0x2e4   :  { %1773 = vmatprep.subr.bf16.mxu0 %v1916_v0 }
 0x3b3   :  { %v386_v37 = vpop.f32.mrb[2].mxu1 }
 0x3b4   :  { %v391_v38 = vrot.slane %v386_v37, 6  ;;  %v1666_v39 = vpop.f32.mrb[3].mxu1 }
 0x3b6   :  { %v393_v40 = vadd.f32 %v391_v38, %v2007_v14  ;;  %v773_v38 = vld [vmem:[#allocation2 + $0x38] sm:$0xff] }
 0x3b8   :  { %v394_v41 = vmul.f32 %v393_v40, %v2009_v16 }
 0x3ba   :  { %1837 = vtanh.f32 %v394_v41 }
 0x3c4   :  { %v1838_v42 = vpop.eup %1837 }
 0x3c5   :  { %v396_v43 = vmul.f32 %v1838_v42, %v2009_v16 }
 0x3c7   :  { %v397_v44 = vadd.f32 %v396_v43, %v2013_v22 }
 0x3c9   :  { %403 = vrot.lane.b32.xlu0 %v397_v44, %s1920_s2  ;;  %v401_v48 = vmul.f32 %v399_v47, %v397_v44 }
 0x43b   :  { %v404_v45 = vpop.permute.xlu0 %403 }
 0x43c   :  { %v406_v46 = vmul.f32 %v404_v45, %v397_v44 }
 0x43e   :  { %408 = vrot.lane.b32.xlu1 %v406_v46, %s1921_s3 }
 0x4b0   :  { %v409_v49 = vpop.permute.xlu1 %408 }
 0x4b1   :  { %v411_v50 = vadd.f32 %v409_v49, %v401_v48 }
 0x4b3   :  { %1839 = vtanh.f32 %v411_v50  ;;  %v576_v8 = vrot.slane %v411_v50, 6 }
 0x4bd   :  { %v1840_v54 = vpop.eup %1839 }
 0x4be   :  { %414 = vrot.lane.b32.xlu0 %v1840_v54, %s1922_s20 }
 0x530   :  { %v415_v55 = vpop.permute.xlu0 %414 }
 0x531   :  { %v417_v56 = vmul.f32 %v415_v55, %v397_v44 }
 0x533   :  { %v421_v57 = vrot.slane %v417_v56, 2 }
 0x535   :  { %422 = vrot.lane.b32.xlu1 %v421_v57, %s1923_s21 }
 0x5a7   :  { %v423_v58 = vpop.permute.xlu1 %422 }
 0x5a8   :  { %1672 = vmatmul.mubr.msk.f32.vlgmr.msra.gmra.mrb[2].mxu0 %vm146_vm5, %v423_v58  ;;  %1679 = vmatmul.mubr.msk.f32.vlgmr.msra.gmra.mrb[4].mxu1 %vm146_vm5, %v423_v58  ;;  %v946_v58 = vld [vmem:[#allocation2 + $0x40] sm:$0xff] }
 0x5a9   :  { %1778 = vmatpush3.bf16.msra.mxu1 %v1990_v7  ;;  %1692 = vmatprep.mubr.msk.f32.mxu1 %vm1917_vm0, %v1918_v1 }
 0x5aa   :  { %1685 = vmatprep.mubr.msk.f32.mxu0 %vm1917_vm0, %v1918_v1  ;;  %1782 = vmatprep.subr.bf16.mxu1 %v1916_v0 }
 0x5ab   :  { %1775 = vmatpush3.bf16.msra.mxu0 %v1774_v17 }
 0x5ac   :  { %1779 = vmatprep.subr.bf16.mxu0 %v1916_v0 }
 0x67b   :  { %v563_v59 = vpop.f32.mrb[4].mxu1 }
 0x67c   :  { %v568_v60 = vrot.slane %v563_v59, 4  ;;  %v1680_v61 = vpop.f32.mrb[5].mxu1  ;;  %v947_v59 = vld [vmem:[#allocation2 + $0x48] sm:$0xff] }
 0x67e   :  { %v570_v62 = vadd.f32 %v568_v60, %v2007_v14  ;;  %v1786_v60 = vpack.c.bf16 %v947_v59, %v946_v58 }
 0x680   :  { %v571_v63 = vmul.f32 %v570_v62, %v2009_v16 }
 0x682   :  { %1841 = vtanh.f32 %v571_v63 }
 0x68c   :  { %v1842_v2 = vpop.eup %1841 }
 0x68d   :  { %v573_v3 = vmul.f32 %v1842_v2, %v2009_v16 }
 0x68f   :  { %v574_v4 = vadd.f32 %v573_v3, %v2013_v22 }
 0x691   :  { %580 = vrot.lane.b32.xlu0 %v574_v4, %s1920_s2  ;;  %v578_v9 = vmul.f32 %v576_v8, %v574_v4 }
 0x703   :  { %v581_v5 = vpop.permute.xlu0 %580 }
 0x704   :  { %v583_v6 = vmul.f32 %v581_v5, %v574_v4 }
 0x706   :  { %585 = vrot.lane.b32.xlu1 %v583_v6, %s1921_s3 }
 0x778   :  { %v586_v10 = vpop.permute.xlu1 %585 }
 0x779   :  { %v588_v11 = vadd.f32 %v586_v10, %v578_v9 }
 0x77b   :  { %1843 = vtanh.f32 %v588_v11  ;;  %v753_v34 = vrot.slane %v588_v11, 6 }
 0x785   :  { %v1844_v18 = vpop.eup %1843 }
 0x786   :  { %591 = vrot.lane.b32.xlu0 %v1844_v18, %s1922_s20 }
 0x7f8   :  { %v592_v19 = vpop.permute.xlu0 %591 }
 0x7f9   :  { %v594_v20 = vmul.f32 %v592_v19, %v574_v4 }
 0x7fb   :  { %v598_v21 = vrot.slane %v594_v20, 4 }
 0x7fd   :  { %599 = vrot.lane.b32.xlu1 %v598_v21, %s1923_s21  ;;  %v1122_v21 = vld [vmem:[#allocation2 + $0x50] sm:$0xff] }
 0x86f   :  { %v600_v23 = vpop.permute.xlu1 %599 }
 0x870   :  { %1686 = vmatmul.mubr.msk.f32.vlgmr.msra.gmra.mrb[2].mxu0 %vm146_vm5, %v600_v23  ;;  %1693 = vmatmul.mubr.msk.f32.vlgmr.msra.gmra.mrb[6].mxu1 %vm146_vm5, %v600_v23  ;;  %v1123_v23 = vld [vmem:[#allocation2 + $0x58] sm:$0xff] }
 0x871   :  { %1784 = vmatpush3.bf16.msra.mxu1 %v1990_v7  ;;  %1706 = vmatprep.mubr.msk.f32.mxu1 %vm1917_vm0, %v1918_v1 }
 0x872   :  { %1699 = vmatprep.mubr.msk.f32.mxu0 %vm1917_vm0, %v1918_v1  ;;  %1788 = vmatprep.subr.bf16.mxu1 %v1916_v0 }
 0x943   :  { %v740_v24 = vpop.f32.mrb[6].mxu1 }
 0x944   :  { %v745_v25 = vrot.slane %v740_v24, 2  ;;  %v1694_v26 = vpop.f32.mrb[7].mxu1  ;;  %v1792_v24 = vpack.c.bf16 %v1123_v23, %v1122_v21 }
 0x946   :  { %v747_v27 = vadd.f32 %v745_v25, %v2007_v14  ;;  %v772_v14 = vld [vmem:[#allocation2 + $0x30] sm:$0xff] }
 0x947   :  { %v1780_v39 = vpack.c.bf16 %v773_v38, %v772_v14 }
 0x948   :  { %v748_v28 = vmul.f32 %v747_v27, %v2009_v16 }
 0x949   :  { %1781 = vmatpush3.bf16.msra.mxu0 %v1780_v39 }
 0x94a   :  { %1845 = vtanh.f32 %v748_v28  ;;  %1785 = vmatprep.subr.bf16.mxu0 %v1916_v0 }
 0x954   :  { %v1846_v29 = vpop.eup %1845 }
 0x955   :  { %v750_v30 = vmul.f32 %v1846_v29, %v2009_v16 }
 0x957   :  { %v751_v31 = vadd.f32 %v750_v30, %v2013_v22 }
 0x959   :  { %757 = vrot.lane.b32.xlu0 %v751_v31, %s1920_s2  ;;  %v755_v35 = vmul.f32 %v753_v34, %v751_v31 }
 0x9cb   :  { %v758_v32 = vpop.permute.xlu0 %757 }
 0x9cc   :  { %v760_v33 = vmul.f32 %v758_v32, %v751_v31 }
 0x9ce   :  { %762 = vrot.lane.b32.xlu1 %v760_v33, %s1921_s3 }
 0xa40   :  { %v763_v36 = vpop.permute.xlu1 %762 }
 0xa41   :  { %v765_v37 = vadd.f32 %v763_v36, %v755_v35 }
 0xa43   :  { %1847 = vtanh.f32 %v765_v37  ;;  %v927_v54 = vrot.slane %v765_v37, 6 }
 0xa4d   :  { %v1848_v40 = vpop.eup %1847 }
 0xa4e   :  { %768 = vrot.lane.b32.xlu0 %v1848_v40, %s1922_s20 }
 0xac0   :  { %v769_v41 = vpop.permute.xlu0 %768 }
 0xac1   :  { %v771_v42 = vmul.f32 %v769_v41, %v751_v31 }
 0xac3   :  { %v775_v43 = vrot.slane %v771_v42, 6  ;;  %v1299_v42 = vld [vmem:[#allocation2 + $0x60] sm:$0xff] }
 0xac5   :  { %776 = vrot.lane.b32.xlu1 %v775_v43, %s1923_s21  ;;  %v1300_v43 = vld [vmem:[#allocation2 + $0x68] sm:$0xff] }
 0xb37   :  { %v777_v44 = vpop.permute.xlu1 %776 }
 0xb38   :  { %1700 = vmatmul.mubr.msk.f32.vlgmr.msra.gmra.mrb[2].mxu0 %vm146_vm5, %v777_v44  ;;  %1707 = vmatmul.mubr.msk.f32.vlgmr.msra.gmra.mrb[8].mxu1 %vm146_vm5, %v777_v44  ;;  %v1798_v44 = vpack.c.bf16 %v1300_v43, %v1299_v42 }
 0xb39   :  { %1790 = vmatpush3.bf16.msra.mxu1 %v1990_v7  ;;  %1720 = vmatprep.mubr.msk.f32.mxu1 %vm1917_vm0, %v1918_v1 }
 0xb3a   :  { %1713 = vmatprep.mubr.msk.f32.mxu0 %vm1917_vm0, %v1918_v1  ;;  %1794 = vmatprep.subr.bf16.mxu1 %v1916_v0 }
 0xb3b   :  { %1787 = vmatpush3.bf16.msra.mxu0 %v1786_v60 }
 0xb3c   :  { %1791 = vmatprep.subr.bf16.mxu0 %v1916_v0 }
 0xc0b   :  { %v917_v45 = vpop.f32.mrb[8].mxu1 }
 0xc0c   :  { %v921_v46 = vadd.f32 %v917_v45, %v2005_v12  ;;  %v1708_v47 = vpop.f32.mrb[9].mxu1 }
 0xc0e   :  { %v922_v48 = vmul.f32 %v921_v46, %v2009_v16 }
 0xc10   :  { %1849 = vtanh.f32 %v922_v48 }
 0xc1a   :  { %v1850_v49 = vpop.eup %1849 }
 0xc1b   :  { %v924_v50 = vmul.f32 %v1850_v49, %v2009_v16 }
 0xc1d   :  { %v925_v51 = vadd.f32 %v924_v50, %v2013_v22 }
 0xc1f   :  { %931 = vrot.lane.b32.xlu0 %v925_v51, %s1920_s2  ;;  %v929_v55 = vmul.f32 %v927_v54, %v925_v51 }
 0xc91   :  { %v932_v52 = vpop.permute.xlu0 %931 }
 0xc92   :  { %v934_v53 = vmul.f32 %v932_v52, %v925_v51 }
 0xc94   :  { %936 = vrot.lane.b32.xlu1 %v934_v53, %s1921_s3 }
 0xd06   :  { %v937_v56 = vpop.permute.xlu1 %936 }
 0xd07   :  { %v939_v57 = vadd.f32 %v937_v56, %v929_v55 }
 0xd09   :  { %1851 = vtanh.f32 %v939_v57  ;;  %v1103_v17 = vrot.slane %v939_v57, 6 }
 0xd13   :  { %v1852_v61 = vpop.eup %1851 }
 0xd14   :  { %942 = vrot.lane.b32.xlu0 %v1852_v61, %s1922_s20 }
 0xd86   :  { %v943_v62 = vpop.permute.xlu0 %942 }
 0xd87   :  { %v945_v63 = vmul.f32 %v943_v62, %v925_v51  ;;  %v1477_v62 = vld [vmem:[#allocation2 + $0x78] sm:$0xff] }
 0xd89   :  { %949 = vrot.lane.b32.xlu1 %v945_v63, %s1923_s21 }
 0xdfb   :  { %v950_v2 = vpop.permute.xlu1 %949 }
 0xdfc   :  { %1714 = vmatmul.mubr.msk.f32.vlgmr.msra.gmra.mrb[2].mxu0 %vm146_vm5, %v950_v2  ;;  %1721 = vmatmul.mubr.msk.f32.vlgmr.msra.gmra.mrb[10].mxu1 %vm146_vm5, %v950_v2 }
 0xdfd   :  { %1796 = vmatpush3.bf16.msra.mxu1 %v1990_v7  ;;  %1734 = vmatprep.mubr.msk.f32.mxu1 %vm1917_vm0, %v1918_v1 }
 0xdfe   :  { %1727 = vmatprep.mubr.msk.f32.mxu0 %vm1917_vm0, %v1918_v1  ;;  %1800 = vmatprep.subr.bf16.mxu1 %v1916_v0 }
 0xdff   :  { %1793 = vmatpush3.bf16.msra.mxu0 %v1792_v24 }
 0xe00   :  { %1797 = vmatprep.subr.bf16.mxu0 %v1916_v0 }
 0xecf   :  { %v1090_v3 = vpop.f32.mrb[10].mxu1 }
 0xed0   :  { %v1095_v4 = vrot.slane %v1090_v3, 6  ;;  %v1722_v5 = vpop.f32.mrb[11].mxu1 }
 0xed1   :  { %v1574_v5 = vld [vmem:[%s2156_s5] ss:$0 sm:$0xff] }
 0xed2   :  { %v1097_v6 = vadd.f32 %v1095_v4, %v2005_v12 }
 0xed4   :  { %v1098_v8 = vmul.f32 %v1097_v6, %v2009_v16 }
 0xed6   :  { %1853 = vtanh.f32 %v1098_v8 }
 0xee0   :  { %v1854_v9 = vpop.eup %1853 }
 0xee1   :  { %v1100_v10 = vmul.f32 %v1854_v9, %v2009_v16 }
 0xee3   :  { %v1101_v11 = vadd.f32 %v1100_v10, %v2013_v22 }
 0xee5   :  { %1107 = vrot.lane.b32.xlu0 %v1101_v11, %s1920_s2  ;;  %v1105_v18 = vmul.f32 %v1103_v17, %v1101_v11 }
 0xf57   :  { %v1108_v13 = vpop.permute.xlu0 %1107 }
 0xf58   :  { %v1110_v15 = vmul.f32 %v1108_v13, %v1101_v11 }
 0xf5a   :  { %1112 = vrot.lane.b32.xlu1 %v1110_v15, %s1921_s3 }
 0xfcc   :  { %v1113_v19 = vpop.permute.xlu1 %1112 }
 0xfcd   :  { %v1115_v20 = vadd.f32 %v1113_v19, %v1105_v18 }
 0xfcf   :  { %1855 = vtanh.f32 %v1115_v20  ;;  %v1280_v38 = vrot.slane %v1115_v20, 6 }
 0xfd9   :  { %v1856_v25 = vpop.eup %1855 }
 0xfda   :  { %1118 = vrot.lane.b32.xlu0 %v1856_v25, %s1922_s20 }
0x104c   :  { %v1119_v26 = vpop.permute.xlu0 %1118 }
0x104d   :  { %v1121_v27 = vmul.f32 %v1119_v26, %v1101_v11 }
0x104f   :  { %v1125_v28 = vrot.slane %v1121_v27, 2 }
0x1051   :  { %1126 = vrot.lane.b32.xlu1 %v1125_v28, %s1923_s21 }
0x10c3   :  { %v1127_v29 = vpop.permute.xlu1 %1126 }
0x10c4   :  { %1728 = vmatmul.mubr.msk.f32.vlgmr.msra.gmra.mrb[2].mxu0 %vm146_vm5, %v1127_v29  ;;  %1735 = vmatmul.mubr.msk.f32.vlgmr.msra.gmra.mrb[12].mxu1 %vm146_vm5, %v1127_v29 }
0x10c5   :  { %1802 = vmatpush3.bf16.msra.mxu1 %v1990_v7  ;;  %1748 = vmatprep.mubr.msk.f32.mxu1 %vm1917_vm0, %v1918_v1 }
0x10c6   :  { %1741 = vmatprep.mubr.msk.f32.mxu0 %vm1917_vm0, %v1918_v1  ;;  %1799 = vmatpush3.bf16.msra.mxu0 %v1798_v44 }
0x10c7   :  { %1803 = vmatprep.subr.bf16.mxu0 %v1916_v0 }
0x1197   :  { %v1267_v30 = vpop.f32.mrb[12].mxu1 }
0x1198   :  { %v1272_v31 = vrot.slane %v1267_v30, 4  ;;  %v1736_v32 = vpop.f32.mrb[13].mxu1 }
0x119a   :  { %v1274_v33 = vadd.f32 %v1272_v31, %v2005_v12 }
0x119c   :  { %v1275_v34 = vmul.f32 %v1274_v33, %v2009_v16 }
0x119e   :  { %1857 = vtanh.f32 %v1275_v34 }
0x11a8   :  { %v1858_v35 = vpop.eup %1857 }
0x11a9   :  { %v1277_v36 = vmul.f32 %v1858_v35, %v2009_v16 }
0x11ab   :  { %v1278_v37 = vadd.f32 %v1277_v36, %v2013_v22 }
0x11ad   :  { %1284 = vrot.lane.b32.xlu0 %v1278_v37, %s1920_s2  ;;  %v1282_v39 = vmul.f32 %v1280_v38, %v1278_v37 }
0x121f   :  { %v1285_v7 = vpop.permute.xlu0 %1284 }
0x1220   :  { %v1287_v14 = vmul.f32 %v1285_v7, %v1278_v37 }
0x1222   :  { %1289 = vrot.lane.b32.xlu1 %v1287_v14, %s1921_s3 }
0x1294   :  { %v1290_v40 = vpop.permute.xlu1 %1289 }
0x1295   :  { %v1292_v41 = vadd.f32 %v1290_v40, %v1282_v39 }
0x1297   :  { %1859 = vtanh.f32 %v1292_v41 }
0x12a1   :  { %v1860_v45 = vpop.eup %1859 }
0x12a2   :  { %1295 = vrot.lane.b32.xlu0 %v1860_v45, %s1922_s20 }
0x1314   :  { %v1296_v46 = vpop.permute.xlu0 %1295 }
0x1315   :  { %v1298_v47 = vmul.f32 %v1296_v46, %v1278_v37 }
0x1317   :  { %v1302_v48 = vrot.slane %v1298_v47, 4 }
0x1319   :  { %1303 = vrot.lane.b32.xlu1 %v1302_v48, %s1923_s21 }
0x138b   :  { %v1304_v49 = vpop.permute.xlu1 %1303 }
0x138c   :  { %1742 = vmatmul.mubr.msk.f32.vlgmr.msra.gmra.mrb[2].mxu0 %vm146_vm5, %v1304_v49  ;;  %1749 = vmatmul.mubr.msk.f32.vlgmr.msra.gmra.mrb[14].mxu1 %vm146_vm5, %v1304_v49 }
0x138d   :  { %1755 = vmatprep.mubr.msk.f32.mxu0 %vm1917_vm0, %v1918_v1  ;;  %v1457_v1 = vrot.slane %v1292_v41, 6 }
0x145f   :  { %v1444_v50 = vpop.f32.mrb[14].mxu1 }
0x1460   :  { %v1449_v51 = vrot.slane %v1444_v50, 2  ;;  %v1750_v52 = vpop.f32.mrb[15].mxu1 }
0x1462   :  { %v1451_v0 = vadd.f32 %v1449_v51, %v2005_v12  ;;  %v1476_v12 = vld [vmem:[#allocation2 + $0x70] sm:$0xff] }
0x1463   :  { %v1804_v63 = vpack.c.bf16 %v1477_v62, %v1476_v12 }
0x1464   :  { %v1452_v53 = vmul.f32 %v1451_v0, %v2009_v16 }
0x1465   :  { %1805 = vmatpush3.bf16.msra.mxu0 %v1804_v63 }
0x1466   :  { %1861 = vtanh.f32 %v1452_v53 }
0x1470   :  { %v1862_v54 = vpop.eup %1861 }
0x1471   :  { %v1454_v55 = vmul.f32 %v1862_v54, %v2009_v16 }
0x1473   :  { %v1455_v56 = vadd.f32 %v1454_v55, %v2013_v22 }
0x1475   :  { %1461 = vrot.lane.b32.xlu0 %v1455_v56, %s1920_s2  ;;  %v1459_v59 = vmul.f32 %v1457_v1, %v1455_v56 }
0x14e7   :  { %v1462_v57 = vpop.permute.xlu0 %1461 }
0x14e8   :  { %v1464_v58 = vmul.f32 %v1462_v57, %v1455_v56 }
0x14ea   :  { %1466 = vrot.lane.b32.xlu1 %v1464_v58, %s1921_s3 }
0x155c   :  { %v1467_v60 = vpop.permute.xlu1 %1466 }
0x155d   :  { %v1469_v61 = vadd.f32 %v1467_v60, %v1459_v59 }
0x155f   :  { %1863 = vtanh.f32 %v1469_v61 }
0x1569   :  { %v1864_v2 = vpop.eup %1863 }
0x156a   :  { %1472 = vrot.lane.b32.xlu0 %v1864_v2, %s1922_s20 }
0x15dc   :  { %v1473_v16 = vpop.permute.xlu0 %1472 }
0x15dd   :  { %v1475_v22 = vmul.f32 %v1473_v16, %v1455_v56 }
0x15df   :  { %v1479_v3 = vrot.slane %v1475_v22, 6 }
0x15e1   :  { %1480 = vrot.lane.b32.xlu1 %v1479_v3, %s1923_s21 }
0x1653   :  { %v1481_v4 = vpop.permute.xlu1 %1480 }
0x1654   :  { %1756 = vmatmul.mubr.msk.f32.vlgmr.msra.gmra.mrb[2].mxu0 %vm146_vm5, %v1481_v4 }
0x1727   :  { %v1550_v6 = vpop.f32.mrb[2].mxu0 }
0x1728   :  { %v1806_v8 = vadd.f32 %v1574_v5, %v1550_v6  ;;  %v1757_v9 = vpop.f32.mrb[3].mxu0 }
0x172a   :  { %1555 = vst [vmem:[#allocation5] sm:$0x3] %v1806_v8 }
0x172b   :  { %1898 = shalt.err (!%p1895_p12)
}
0x172c   :  { %s1899_s29 = scalar_lea.hbm %s2157_s6, 32 }
0x172d   :  { %p1900_p13 = scmp.ne.s32.totalorder %s2157_s6, %s1899_s29  ;;  %p1903_p0 = scmp.lt.u32.totalorder %s1899_s29, %s2157_s6 }
0x172f   :  { %p1905_p1 = pnand %p1903_p0, %p1900_p13 }
0x1731   :  { %1908 = shalt.err (!%p1905_p1)
}
0x1732   :  { %1565 = dma.vmem_to_hbm [thread:$0]  %s1563_s25, 32, %s2157_s6, [#allocation4]  }
0x1733   :  { %1911 = dma.done.wait [#allocation4], 32  }
0x1734   :  { %1912 = vsyncadd [#allocation4], 4294967264 }
0x1735   :  { %1569 = vsyncpa [#allocation3], 1 }
0x1736   :  { %1570 = vsyncpa [#allocation4], 1 }

</bundles_post_ra>
